<compile_context>
chip_gen: v6e
topology: v6e:2x2x1
jax: 0.10.0
libtpu: 0.0.40
codegen_flags: <defaults>
</compile_context>

<pallas_src>
import functools

import jax
import jax.numpy as jnp
from jax.experimental import pallas as pl
from jax.experimental.pallas import tpu as pltpu

BN_EPS = 1e-5


# ---------------- fused Root kernel -------------------------------------------

def _root_kernel(*refs, n_inputs):
    # refs = (x_0, ..., x_{n-1}, w_0, ..., w_{n-1}, bias, out)
    #   x_i  : (C_i, HWt)   activations for the current sample, spatial on lanes
    #   w_i  : (Cout, C_i)  BN-scale-folded 1x1-conv weight slice for input i
    #   bias : (Cout, 1)    folded BN bias
    #   out  : (Cout, HWt)
    x_refs = refs[:n_inputs]
    w_refs = refs[n_inputs:2 * n_inputs]
    b_ref = refs[2 * n_inputs]
    o_ref = refs[2 * n_inputs + 1]

    acc = None
    for i in range(n_inputs):            # static unroll; implicit channel concat
        part = jnp.dot(w_refs[i][...], x_refs[i][...],
                       preferred_element_type=jnp.float32,
                       precision=jax.lax.Precision.HIGHEST)
        acc = part if acc is None else acc + part

    out = jnp.maximum(acc + b_ref[...], 0.0)   # (Cout,1) broadcasts along lanes
    o_ref[...] = out.astype(o_ref.dtype)


def _pick_hw_tile(hw, max_tile=2048):
    """Lane tile over H*W.  Full extent when it fits (always layout-legal);
    otherwise the largest 128-multiple divisor <= max_tile (VMEM-friendly on
    v7x's 64 MiB as well as v5e/v6e's 128 MiB)."""
    if hw <= max_tile:
        return hw
    for t in (2048, 1024, 512, 256, 128):
        if t <= max_tile and hw % t == 0:
            return t
    return hw  # fallback: full extent is always legal


def root_forward(xs, w, gamma, beta, mean, var):
    """Root forward. xs: list of NCHW f32 arrays; w: (Cout, sum(Ci), 1, 1)."""
    n_inputs = len(xs)
    N, _, H, W = xs[0].shape
    HW = H * W
    in_ch = tuple(int(x.shape[1]) for x in xs)
    k_tot = sum(in_ch)
    cout = int(w.shape[0])

    # Free reshapes only: (N, Ci, H, W) -> (N, Ci, H*W).  No transposes.
    x_resh = [x.reshape(x.shape[0], x.shape[1], HW) for x in xs]

    # Fold BN (eval mode): scale into the weight, bias kept separately.
    scale = gamma * jax.lax.rsqrt(var + BN_EPS)            # (Cout,)
    bias = (beta - mean * scale).reshape(cout, 1)          # (Cout, 1)
    w_mat = w.reshape(cout, k_tot).astype(jnp.float32) * scale[:, None]

    # Pre-split the folded weight per input (static slices; free in XLA) so the
    # kernel never lane-slices at a non-128-aligned concat offset.
    w_splits = []
    off = 0
    for ci in in_ch:
        w_splits.append(w_mat[:, off:off + ci])
        off += ci

    hw_tile = _pick_hw_tile(HW)
    grid = (N, HW // hw_tile)

    x_specs = [
        pl.BlockSpec((pl.Squeezed(), ci, hw_tile), lambda n, m: (n, 0, m))
        for ci in in_ch
    ]
    w_specs = [
        pl.BlockSpec((cout, ci), lambda n, m: (0, 0)) for ci in in_ch
    ]
    b_spec = pl.BlockSpec((cout, 1), lambda n, m: (0, 0))
    out_spec = pl.BlockSpec((pl.Squeezed(), cout, hw_tile),
                            lambda n, m: (n, 0, m))

    kernel = functools.partial(_root_kernel, n_inputs=n_inputs)
    out = pl.pallas_call(
        kernel,
        out_shape=jax.ShapeDtypeStruct((N, cout, HW), jnp.float32),
        grid=grid,
        in_specs=x_specs + w_specs + [b_spec],
        out_specs=out_spec,
        compiler_params=pltpu.CompilerParams(
            dimension_semantics=("parallel", "arbitrary")),
    )(*x_resh, *w_splits, bias)

    # Free reshape back to NCHW.
    return out.reshape(N, cout, H, W)


# ---------------- pure-JAX reference (same math, no Pallas) --------------------

def root_reference(xs, w, gamma, beta, mean, var):
    x = jnp.concatenate(xs, axis=1)                        # NCHW channel concat
    cout = w.shape[0]
    w_mat = w.reshape(cout, x.shape[1])
    y = jnp.einsum("nkhw,ok->nohw", x, w_mat,
                   precision=jax.lax.Precision.HIGHEST)    # 1x1 conv, no bias
    scale = gamma * jax.lax.rsqrt(var + BN_EPS)
    bias = beta - mean * scale
    y = y * scale[None, :, None, None] + bias[None, :, None, None]
    return jnp.maximum(y, 0.0)


# ---------------- main ----------------------------------------------------------

if __name__ == "__main__":
    key = jax.random.PRNGKey(0)
    k1, k2, kw, kg, kb, km, kv = jax.random.split(key, 7)

    # DLA-style Root: two feature maps of Cout channels each -> Cout channels.
    N, C1, C2, H, W = 2, 8, 8, 16, 16
    Cout = 8

    x1 = jax.random.normal(k1, (N, C1, H, W), jnp.float32)
    x2 = jax.random.normal(k2, (N, C2, H, W), jnp.float32)
    w = 0.1 * jax.random.normal(kw, (Cout, C1 + C2, 1, 1), jnp.float32)
    gamma = 1.0 + 0.1 * jax.random.normal(kg, (Cout,), jnp.float32)
    beta = 0.1 * jax.random.normal(kb, (Cout,), jnp.float32)
    mean = 0.1 * jax.random.normal(km, (Cout,), jnp.float32)
    var = 1.0 + 0.1 * jnp.abs(jax.random.normal(kv, (Cout,), jnp.float32))

    fwd = jax.jit(lambda a, b: root_forward([a, b], w, gamma, beta, mean, var))
    out = jax.block_until_ready(fwd(x1, x2))
    assert out.shape == (N, Cout, H, W), out.shape

    ref = root_reference([x1, x2], w, gamma, beta, mean, var)
    max_err = float(jnp.max(jnp.abs(out - ref)))
    if max_err > 1e-4:
        raise AssertionError(f"Pallas output mismatch vs reference: max abs err {max_err}")

    print("KERNEL_OK")
</pallas_src>

<mosaic_0001>
module attributes {stable_mosaic.version = 11 : i64} {
  func.func @_root_kernel(%arg0: i32, %arg1: i32, %arg2: memref<1x8x256xf32, #tpu.memory_space<vmem>>, %arg3: memref<1x8x256xf32, #tpu.memory_space<vmem>>, %arg4: memref<8x8xf32, #tpu.memory_space<vmem>>, %arg5: memref<8x8xf32, #tpu.memory_space<vmem>>, %arg6: memref<8x1xf32, #tpu.memory_space<vmem>>, %arg7: memref<1x8x256xf32, #tpu.memory_space<vmem>>) attributes {dimension_semantics = [#tpu.dimension_semantics<parallel>, #tpu.dimension_semantics<arbitrary>], iteration_bounds = array<i64: 2, 1>, scalar_prefetch = 0 : i64, scratch_operands = 0 : i64, tpu.core_type = #tpu.core_type<tc>, window_params = [{transform_indices = @transform_0, window_bounds = array<i64: 1, 8, 256>}, {transform_indices = @transform_1, window_bounds = array<i64: 1, 8, 256>}, {pipeline_mode = #tpu.pipeline_mode<synchronous>, transform_indices = @transform_2, window_bounds = array<i64: 8, 8>}, {pipeline_mode = #tpu.pipeline_mode<synchronous>, transform_indices = @transform_3, window_bounds = array<i64: 8, 8>}, {pipeline_mode = #tpu.pipeline_mode<synchronous>, transform_indices = @transform_4, window_bounds = array<i64: 8, 1>}, {transform_indices = @transform_5, window_bounds = array<i64: 1, 8, 256>}]} {
    %c0 = arith.constant 0 : index
    %c0_0 = arith.constant 0 : index
    %0 = vector.load %arg4[%c0, %c0_0] : memref<8x8xf32, #tpu.memory_space<vmem>>, vector<8x8xf32>
    %c0_1 = arith.constant 0 : index
    %c0_2 = arith.constant 0 : index
    %c0_3 = arith.constant 0 : index
    %1 = vector.load %arg2[%c0_1, %c0_2, %c0_3] : memref<1x8x256xf32, #tpu.memory_space<vmem>>, vector<1x8x256xf32>
    %2 = vector.shape_cast %1 : vector<1x8x256xf32> to vector<8x256xf32>
    %cst = arith.constant dense<0.000000e+00> : vector<8x256xf32>
    %3 = tpu.matmul %0, %2, %cst {dimension_numbers = #tpu.dot_dimension_numbers<[1], [0], [0], [1], [0, 0, 1, 1], [], []>, precision = #tpu.contract_precision<fp32>} : vector<8x8xf32>, vector<8x256xf32>, vector<8x256xf32> -> vector<8x256xf32>
    %c0_4 = arith.constant 0 : index
    %c0_5 = arith.constant 0 : index
    %4 = vector.load %arg5[%c0_4, %c0_5] : memref<8x8xf32, #tpu.memory_space<vmem>>, vector<8x8xf32>
    %c0_6 = arith.constant 0 : index
    %c0_7 = arith.constant 0 : index
    %c0_8 = arith.constant 0 : index
    %5 = vector.load %arg3[%c0_6, %c0_7, %c0_8] : memref<1x8x256xf32, #tpu.memory_space<vmem>>, vector<1x8x256xf32>
    %6 = vector.shape_cast %5 : vector<1x8x256xf32> to vector<8x256xf32>
    %cst_9 = arith.constant dense<0.000000e+00> : vector<8x256xf32>
    %7 = tpu.matmul %4, %6, %cst_9 {dimension_numbers = #tpu.dot_dimension_numbers<[1], [0], [0], [1], [0, 0, 1, 1], [], []>, precision = #tpu.contract_precision<fp32>} : vector<8x8xf32>, vector<8x256xf32>, vector<8x256xf32> -> vector<8x256xf32>
    %8 = arith.addf %3, %7 : vector<8x256xf32>
    %c0_10 = arith.constant 0 : index
    %c0_11 = arith.constant 0 : index
    %9 = vector.load %arg6[%c0_10, %c0_11] : memref<8x1xf32, #tpu.memory_space<vmem>>, vector<8x1xf32>
    %10 = vector.broadcast %9 : vector<8x1xf32> to vector<8x256xf32>
    %11 = arith.addf %8, %10 : vector<8x256xf32>
    %cst_12 = arith.constant 0.000000e+00 : f32
    %12 = vector.broadcast %cst_12 : f32 to vector<8x256xf32>
    %13 = arith.maximumf %11, %12 : vector<8x256xf32>
    %c0_13 = arith.constant 0 : index
    %c0_14 = arith.constant 0 : index
    %c0_15 = arith.constant 0 : index
    %14 = vector.load %arg7[%c0_13, %c0_14, %c0_15] : memref<1x8x256xf32, #tpu.memory_space<vmem>>, vector<1x8x256xf32>
    %15 = vector.shape_cast %14 : vector<1x8x256xf32> to vector<8x256xf32>
    %16 = vector.shape_cast %13 : vector<8x256xf32> to vector<1x8x256xf32>
    tpu.vector_store %arg7[%c0_13, %c0_14, %c0_15], %16 {strides = array<i32>} : memref<1x8x256xf32, #tpu.memory_space<vmem>>, vector<1x8x256xf32>,
    return
  }
  func.func @transform_0(%arg0: i32, %arg1: i32) -> (i32, i32, i32) {
    %c0_i32 = arith.constant 0 : i32
    %c0_i32_0 = arith.constant 0 : i32
    return %arg0, %c0_i32, %arg1 : i32, i32, i32
  }
  func.func @transform_1(%arg0: i32, %arg1: i32) -> (i32, i32, i32) {
    %c0_i32 = arith.constant 0 : i32
    %c0_i32_0 = arith.constant 0 : i32
    return %arg0, %c0_i32, %arg1 : i32, i32, i32
  }
  func.func @transform_2(%arg0: i32, %arg1: i32) -> (i32, i32) {
    %c0_i32 = arith.constant 0 : i32
    %c0_i32_0 = arith.constant 0 : i32
    %c0_i32_1 = arith.constant 0 : i32
    return %c0_i32, %c0_i32_0 : i32, i32
  }
  func.func @transform_3(%arg0: i32, %arg1: i32) -> (i32, i32) {
    %c0_i32 = arith.constant 0 : i32
    %c0_i32_0 = arith.constant 0 : i32
    %c0_i32_1 = arith.constant 0 : i32
    return %c0_i32, %c0_i32_0 : i32, i32
  }
  func.func @transform_4(%arg0: i32, %arg1: i32) -> (i32, i32) {
    %c0_i32 = arith.constant 0 : i32
    %c0_i32_0 = arith.constant 0 : i32
    %c0_i32_1 = arith.constant 0 : i32
    return %c0_i32, %c0_i32_0 : i32, i32
  }
  func.func @transform_5(%arg0: i32, %arg1: i32) -> (i32, i32, i32) {
    %c0_i32 = arith.constant 0 : i32
    %c0_i32_0 = arith.constant 0 : i32
    return %arg0, %c0_i32, %arg1 : i32, i32, i32
  }
}

</mosaic_0001>

<bundles_post_ra>
// kernel: _lambda_.1
= control target key start
LH: loop header
LB: loop body
LE: loop exit
PB: predicated region body
PF: predicated region fallthrough
CT: control target
= control target key end

     0   :  { %s1459_s18 = smov 0   ;;  %s1461_s19 = smov 0   ;;  %s1545_s0 = inlined_call_operand.vmem [shape: f32[2,8,256], index: 0, kind: input, shape index: {}]   ;;  %s1546_s1 = inlined_call_operand.vmem [shape: f32[2,8,256], index: 1, kind: input, shape index: {}]   ;;  %s1547_s2 = inlined_call_operand.vmem [shape: f32[8,8], index: 2, kind: input, shape index: {}]   ;;  %s1548_s3 = inlined_call_operand.vmem [shape: f32[8,8], index: 3, kind: input, shape index: {}]   ;;  %s1549_s4 = inlined_call_operand.vmem [shape: f32[8,1], index: 4, kind: input, shape index: {}]   ;;  %s1550_s5 = inlined_call_operand.vmem [shape: f32[2,8,256], index: 5, kind: output, shape index: {}]  }
   0x1   :  { %s1463_s20 = smov 0  }
   0x2 LB: > { %s27_s21 = sadd.s32 1, %s1421_s19  ;;  %p1364_p0 = scmp.ge.s32.totalorder %s1425_s20, 1  ;;  %s1425_s20 = sphi %s1463_s20, %s15_s20   ;;  %s1421_s19 = sphi %s1461_s19, %s1552_s19   ;;  %s1417_s18 = sphi %s1459_s18, %s1551_s18  }
   0x3   : > { %p29_p1 = scmp.ge.s32.totalorder %s27_s21, 2  ;;  %p225_p2 = scmp.lt.s32.totalorder %s1425_s20, 3 }
   0x5   : > { %s1554_s21 = smov (%p29_p1, %s27_s21), 0  ;;  %p226_p3 = pnand %p1364_p0, %p225_p2 }
   0x6   : > { %p271_p4 = scmp.lt.s32.totalorder (!%p226_p3), %s1417_s18, 1 }
   0x7   : > { %229 = sbr.rel (%p226_p3) target bundleno = 252 (0xfc), region = 40 }
   0xc   : > { %v300_v0 = vld [vmem:[%s1547_s2] sm:$0xff]  ;;  %vm306_vm0 = vcmask 64512   ;;  %v1427_v2 = vmov 0.0   ;;  %s1556_s18 = smov (!%p271_p4, %s1417_s18), 1  ;;  %v1428_v7 = vmov 0  }
   0xd   : > { %v303_v1 = vld [vmem:[%s1548_s3] sm:$0xff]  ;;  %376 = vmatprep.mubr.f32.mxu0 %v1427_v2  ;;  %462 = vmatprep.mubr.f32.mxu1 %v1427_v2  ;;  %v776_v6 = vsel %vm306_vm0, %v300_v0, 0  ;;  %s1490_s28 = sshll.u32 %s1556_s18, 4 }
   0xe   : > { %v308_v3 = vsel %vm306_vm0, %v303_v1, 0  ;;  %v1243_v4 = vld [vmem:[%s1549_s4] sm:$0xff]  ;;  %1402 = vset.pattern.permute.xlu0 %v1428_v7  ;;  %s288_s6 = scalar_lea.vmem %s1546_s1, %s1490_s28  ;;  %v1497_v9 = vand.u32 4294901760, %v776_v6  ;;  %s278_s9 = scalar_lea.vmem %s1545_s0, %s1490_s28 }
   0xf   : > { %v1488_v5 = vand.u32 4294901760, %v308_v3  ;;  %1246 = vperm.xlu0 %1402, %v1243_v4   ;;  %v305_v10 = vld [vmem:[%s288_s6 + $0x8] sm:$0xff]  ;;  %v304_v11 = vld [vmem:[%s288_s6] sm:$0xff]  ;;  %s298_s12 = scalar_lea.vmem %s1550_s5, %s1490_s28 }
  0x10   : > { %v302_v13 = vld [vmem:[%s278_s9 + $0x8] sm:$0xff]  ;;  %v340_v14 = vand.u32 4294901760, %v305_v10  ;;  %v342_v15 = vand.u32 4294901760, %v304_v11  ;;  %v301_v17 = vld [vmem:[%s278_s9] sm:$0xff]  ;;  %v846_v23 = vsub.f32 %v776_v6, %v1497_v9 }
  0x11   : > { %v378_v8 = vsub.f32 %v308_v3, %v1488_v5  ;;  %v1503_v16 = vand.u32 4294901760, %v302_v13  ;;  %v1505_v19 = vand.u32 4294901760, %v301_v17 }
  0x12   : > { %341 = vmatprep.subr.mxu0 %v340_v14  ;;  %v419_v20 = vsub.f32 %v305_v10, %v340_v14  ;;  %v425_v21 = vsub.f32 %v304_v11, %v342_v15  ;;  %v847_v31 = vand.u32 4294901760, %v846_v23 }
  0x13   : > { %v379_v12 = vand.u32 4294901760, %v378_v8  ;;  %v887_v22 = vsub.f32 %v302_v13, %v1503_v16  ;;  %343 = vmatpush1.msra.mxu0 %v342_v15  ;;  %v893_v27 = vsub.f32 %v301_v17, %v1505_v19 }
  0x14   : > { %v420_v25 = vand.u32 4294901760, %v419_v20  ;;  %502 = vmatprep.subr.mxu0 %v419_v20  ;;  %v426_v26 = vand.u32 4294901760, %v425_v21  ;;  %v848_v36 = vsub.f32 %v846_v23, %v847_v31 }
  0x15   : > { %v380_v18 = vsub.f32 %v378_v8, %v379_v12  ;;  %v888_v30 = vand.u32 4294901760, %v887_v22  ;;  %v894_v34 = vand.u32 4294901760, %v893_v27 }
  0x16   : > { %v421_v28 = vsub.f32 %v419_v20, %v420_v25  ;;  %v427_v29 = vsub.f32 %v425_v21, %v426_v26  ;;  %v849_v39 = vand.u32 4294901760, %v848_v36 }
  0x17   : > { %v381_v24 = vand.u32 4294901760, %v380_v18  ;;  %v889_v35 = vsub.f32 %v887_v22, %v888_v30  ;;  %v895_v37 = vsub.f32 %v893_v27, %v894_v34 }
  0x18   : > { %v422_v32 = vand.u32 4294901760, %v421_v28  ;;  %v428_v33 = vand.u32 4294901760, %v427_v29 }
  0x19   : > { %382 = vmatmul.mubr.f32.vlgmr.msra.gmra.mxu0 %v381_v24  ;;  %v890_v38 = vand.u32 4294901760, %v889_v35  ;;  %v896_v40 = vand.u32 4294901760, %v895_v37 }
  0x1a   : > { %505 = vmatpush1.msra.mxu0 %v425_v21  ;;  %538 = vmatprep.mubr.f32.mxu0 %v1427_v2 }
  0x1b   : > { %656 = vmatprep.subr.mxu0 %v420_v25  ;;  %423 = vmatprep.subr.mxu1 %v422_v32 }
  0x1c   : > { %429 = vmatpush1.msra.mxu1 %v428_v33 }
  0x1d   : > { %541 = vmatmul.mubr.f32.vlgmr.msra.gmra.mxu0 %v378_v8  ;;  %464 = vmatmul.mubr.f32.vlgmr.msra.gmra.mxu1 %v1488_v5 }
  0x1e   : > { %660 = vmatpush1.msra.mxu0 %v426_v26  ;;  %693 = vmatprep.mubr.f32.mxu0 %v1427_v2 }
  0x1f   : > { %578 = vmatprep.subr.mxu1 %v340_v14  ;;  %613 = vmatprep.mubr.f32.mxu1 %v1427_v2 }
  0x20   : > { %580 = vmatpush1.msra.mxu1 %v342_v15  ;;  %809 = vmatprep.subr.mxu0 %v1503_v16 }
  0x21   : > { %732 = vmatprep.subr.mxu1 %v340_v14  ;;  %695 = vmatmul.mubr.f32.vlgmr.msra.gmra.mxu0 %v1488_v5 }
  0x22   : > { %844 = vmatprep.mubr.f32.mxu0 %v1427_v2  ;;  %617 = vmatmul.mubr.f32.vlgmr.msra.gmra.mxu1 %v379_v12 }
  0x23   : > { %811 = vmatpush1.msra.mxu0 %v1505_v19  ;;  %734 = vmatpush1.msra.mxu1 %v342_v15 }
  0x24   : > { %767 = vmatprep.mubr.f32.mxu1 %v1427_v2  ;;  %891 = vmatprep.subr.mxu1 %v890_v38 }
  0x25   : > { %850 = vmatmul.mubr.f32.vlgmr.msra.gmra.mxu0 %v849_v39  ;;  %970 = vmatprep.subr.mxu0 %v887_v22 }
  0x26   : > { %1006 = vmatprep.mubr.f32.mxu0 %v1427_v2  ;;  %769 = vmatmul.mubr.f32.vlgmr.msra.gmra.mxu1 %v1488_v5 }
  0x27   : > { %973 = vmatpush1.msra.mxu0 %v893_v27  ;;  %897 = vmatpush1.msra.mxu1 %v896_v40 }
  0x28   : > { %930 = vmatprep.mubr.f32.mxu1 %v1427_v2  ;;  %1046 = vmatprep.subr.mxu1 %v1503_v16 }
  0x29   : > { %1009 = vmatmul.mubr.f32.vlgmr.msra.gmra.mxu0 %v846_v23  ;;  %1124 = vmatprep.subr.mxu0 %v888_v30 }
  0x2a   : > { %1161 = vmatprep.mubr.f32.mxu0 %v1427_v2  ;;  %932 = vmatmul.mubr.f32.vlgmr.msra.gmra.mxu1 %v1497_v9 }
  0x2b   : > { %1128 = vmatpush1.msra.mxu0 %v894_v34  ;;  %1048 = vmatpush1.msra.mxu1 %v1505_v19 }
  0x2c   : > { %1081 = vmatprep.mubr.f32.mxu1 %v1427_v2  ;;  %1200 = vmatprep.subr.mxu1 %v1503_v16 }
  0x2d   : > { %1163 = vmatmul.mubr.f32.vlgmr.msra.gmra.mxu0 %v1497_v9 }
  0x2e   : > { %1085 = vmatmul.mubr.f32.vlgmr.msra.gmra.mxu1 %v847_v31 }
  0x2f   : > { %1202 = vmatpush1.msra.mxu1 %v1505_v19  ;;  %1235 = vmatprep.mubr.f32.mxu1 %v1427_v2 }
  0x32   : > { %1237 = vmatmul.mubr.f32.vlgmr.msra.gmra.mxu1 %v1497_v9 }
  0x8a   : > { %v1247_v17 = vpop.permute.xlu0 %1246 }
  0xd9   : > { %v383_v41 = vpop.f32.mrf.mxu0 }
  0xdb   : > { %v385_v42 = vpop.f32.mrf.mxu0 }
  0xdd   : > { %v542_v43 = vpop.f32.mrf.mxu0  ;;  %v465_v45 = vpop.f32.mrf.mxu1 }
  0xde   : > { %v466_v46 = vadd.f32 %v465_v45, %v383_v41 }
  0xdf   : > { %v544_v44 = vpop.f32.mrf.mxu0  ;;  %v467_v47 = vpop.f32.mrf.mxu1 }
  0xe0   : > { %v543_v49 = vadd.f32 %v542_v43, %v466_v46  ;;  %v468_v50 = vadd.f32 %v467_v47, %v385_v42 }
  0xe1   : > { %v696_v48 = vpop.f32.mrf.mxu0 }
  0xe2   : > { %v618_v51 = vpop.f32.mrf.mxu1  ;;  %v545_v53 = vadd.f32 %v544_v44, %v468_v50 }
  0xe3   : > { %v698_v52 = vpop.f32.mrf.mxu0  ;;  %v619_v54 = vadd.f32 %v618_v51, %v543_v49 }
  0xe4   : > { %v620_v55 = vpop.f32.mrf.mxu1 }
  0xe5   : > { %v851_v56 = vpop.f32.mrf.mxu0  ;;  %v697_v57 = vadd.f32 %v696_v48, %v619_v54  ;;  %v621_v58 = vadd.f32 %v620_v55, %v545_v53 }
  0xe6   : > { %v770_v59 = vpop.f32.mrf.mxu1 }
  0xe7   : > { %v853_v60 = vpop.f32.mrf.mxu0  ;;  %v699_v61 = vadd.f32 %v698_v52, %v621_v58  ;;  %v771_v62 = vadd.f32 %v770_v59, %v697_v57 }
  0xe8   : > { %v772_v63 = vpop.f32.mrf.mxu1 }
  0xe9   : > { %v1010_v0 = vpop.f32.mrf.mxu0  ;;  %v852_v1 = vadd.f32 %v851_v56, %v771_v62  ;;  %v773_v2 = vadd.f32 %v772_v63, %v699_v61 }
  0xea   : > { %v933_v3 = vpop.f32.mrf.mxu1 }
  0xeb   : > { %v1012_v4 = vpop.f32.mrf.mxu0  ;;  %v854_v5 = vadd.f32 %v853_v60, %v773_v2  ;;  %v934_v6 = vadd.f32 %v933_v3, %v852_v1 }
  0xec   : > { %v935_v7 = vpop.f32.mrf.mxu1 }
  0xed   : > { %v1011_v8 = vadd.f32 %v1010_v0, %v934_v6  ;;  %v936_v9 = vadd.f32 %v935_v7, %v854_v5  ;;  %v1164_v11 = vpop.f32.mrf.mxu0 }
  0xee   : > { %v1086_v10 = vpop.f32.mrf.mxu1 }
  0xef   : > { %v1013_v12 = vadd.f32 %v1012_v4, %v936_v9  ;;  %v1087_v13 = vadd.f32 %v1086_v10, %v1011_v8  ;;  %v1166_v18 = vpop.f32.mrf.mxu0 }
  0xf0   : > { %v1088_v14 = vpop.f32.mrf.mxu1 }
  0xf1   : > { %v1165_v15 = vadd.f32 %v1164_v11, %v1087_v13  ;;  %v1089_v16 = vadd.f32 %v1088_v14, %v1013_v12 }
  0xf2   : > { %v1238_v19 = vpop.f32.mrf.mxu1 }
  0xf3   : > { %v1167_v20 = vadd.f32 %v1166_v18, %v1089_v16  ;;  %v1239_v21 = vadd.f32 %v1238_v19, %v1165_v15 }
  0xf4   : > { %v1240_v22 = vpop.f32.mrf.mxu1 }
  0xf5   : > { %v1249_v23 = vadd.f32 %v1247_v17, %v1239_v21  ;;  %v1241_v24 = vadd.f32 %v1240_v22, %v1167_v20 }
  0xf7   : > { %v1251_v25 = vmax.f32 %v1249_v23, 0.0  ;;  %v1250_v26 = vadd.f32 %v1247_v17, %v1241_v24 }
  0xf9   : > { %1253 = vst [vmem:[%s298_s12] sm:$0xff] %v1251_v25  ;;  %v1252_v27 = vmax.f32 %v1250_v26, 0.0 }
  0xfb   : > { %1254 = vst [vmem:[%s298_s12 + $0x8] sm:$0xff] %v1252_v27 }
  0xfc PF: > { %s15_s20 = sadd.s32 1, %s1425_s20   ;;  %s1551_s18 = smov %s1421_s19 }
  0xfd   : > { %p12_p5 = scmp.ge.s32.totalorder %s15_s20, 4   ;;  %s1552_s19 = smov %s1554_s21 }
  0xff   :  { %14 = sbr.rel (!%p12_p5) target bundleno = 2 (0x2), region = 73 }

</bundles_post_ra>
